<compile_context>
chip_gen: v6e
topology: v6e:2x2x1
jax: 0.10.0
libtpu: 0.0.40
codegen_flags: <defaults>
</compile_context>

<pallas_src>
import functools

import jax
import jax.numpy as jnp
from jax import lax
from jax.experimental import pallas as pl
from jax.experimental.pallas import tpu as pltpu


def _rmsnorm_kernel(x_ref, g_ref, o_ref, *, inv_dim, eps_sq):
    # x_ref: (row_tile, dim) block in VMEM, g_ref: (1, dim) resident f32 gain.
    x32 = x_ref[...].astype(jnp.float32)
    ss = jnp.sum(x32 * x32, axis=-1, keepdims=True)        # lane-axis reduce, f32 acc
    # x / max(||x||*dim^-0.5, eps) == x * rsqrt(max(ss/dim, eps^2))
    # (sqrt is monotone on non-negatives, so the clamp commutes with sqrt).
    inv = lax.rsqrt(jnp.maximum(ss * inv_dim, eps_sq))      # single EUP op per row
    o_ref[...] = (x32 * inv * g_ref[...]).astype(o_ref.dtype)


def _chip_config():
    """Return (vmem_limit_bytes, num_tensorcores) for the local TPU generation."""
    vmem_phys = None
    try:
        vmem_phys = int(pltpu.get_tpu_info().vmem_capacity_bytes)
    except Exception:
        vmem_phys = None

    kind = ""
    try:
        kind = jax.devices()[0].device_kind.lower()
    except Exception:
        pass

    looks_like_v7 = ("v7" in kind) or ("7x" in kind)
    if vmem_phys is None:
        vmem_phys = 64 * 2**20 if looks_like_v7 else 128 * 2**20

    # v7x: 2 TensorCores / chip, 64 MiB VMEM; v5e/v6e: 1 TC, 128 MiB.
    num_tc = 2 if (looks_like_v7 or vmem_phys <= 80 * 2**20) else 1
    vmem_limit = max(32 * 2**20, min(vmem_phys - 16 * 2**20, 100 * 2**20))
    return int(vmem_limit), num_tc


def _pick_row_tile(rows, dim, dtype, vmem_limit_bytes, num_tc):
    """Largest sublane-multiple row tile whose buffers + temps fit the VMEM limit."""
    itemsize = jnp.dtype(dtype).itemsize
    sublane = {4: 8, 2: 16, 1: 32}.get(itemsize, 8)          # sublane packing multiple
    rows_ceil = -(-rows // sublane) * sublane

    # Per step: 2x input buffers + 2x output buffers (4*itemsize bytes/elem)
    # plus ~2 f32-sized in-kernel temporaries (8 bytes/elem), under the limit.
    headroom = 8 * 2**20
    budget = max(vmem_limit_bytes - headroom, 4 * 2**20)
    bytes_per_row = dim * (4 * itemsize + 8)
    tile = max(budget // bytes_per_row, sublane)
    tile = min((tile // sublane) * sublane, 32768)           # sanity cap on sublane count
    tile = min(tile, rows_ceil)

    # On 2-TC chips, keep the grid-step count even so both cores get equal work.
    if num_tc >= 2 and rows_ceil >= 2 * sublane:
        steps = -(-rows_ceil // tile)
        if steps % 2 == 1:
            steps += 1
            tile = -(-rows_ceil // steps)
            tile = -(-tile // sublane) * sublane

    return max(tile, sublane)


def rmsnorm(x, g, eps=1e-8, row_tile=None):
    """x: [..., dim] float array, g: [dim] gain. Returns same shape/dtype as x."""
    dim = x.shape[-1]
    orig_shape = x.shape
    x2 = x.reshape(-1, dim)
    rows = x2.shape[0]

    vmem_limit, num_tc = _chip_config()
    if row_tile is None:
        row_tile = _pick_row_tile(rows, dim, x.dtype, vmem_limit, num_tc)

    g2 = g.reshape(1, dim).astype(jnp.float32)               # cast once, stays resident
    grid = (pl.cdiv(rows, row_tile),)                         # partial last block is masked

    kernel = functools.partial(
        _rmsnorm_kernel, inv_dim=1.0 / float(dim), eps_sq=float(eps) * float(eps))

    itemsize = jnp.dtype(x.dtype).itemsize
    cost = pl.CostEstimate(
        flops=4 * rows * dim,                                 # square, reduce, two muls
        transcendentals=rows,                                 # one rsqrt per row
        bytes_accessed=2 * rows * dim * itemsize + dim * 4,
    )

    out = pl.pallas_call(
        kernel,
        out_shape=jax.ShapeDtypeStruct((rows, dim), x.dtype),
        grid_spec=pltpu.PrefetchScalarGridSpec(
            num_scalar_prefetch=0,
            grid=grid,
            in_specs=[
                pl.BlockSpec((row_tile, dim), lambda i: (i, 0)),
                pl.BlockSpec((1, dim), lambda i: (0, 0)),     # constant index -> resident
            ],
            out_specs=pl.BlockSpec((row_tile, dim), lambda i: (i, 0)),
        ),
        compiler_params=pltpu.CompilerParams(
            dimension_semantics=("parallel",),
            vmem_limit_bytes=vmem_limit,
        ),
        cost_estimate=cost,
    )(x2, g2)

    return out.reshape(orig_shape)


def _ref_rmsnorm(x, g, eps=1e-8):
    dim = x.shape[-1]
    norm = jnp.linalg.norm(x.astype(jnp.float32), axis=-1, keepdims=True) * (dim ** -0.5)
    return (x.astype(jnp.float32) / jnp.maximum(norm, eps)) * g.astype(jnp.float32)


if __name__ == "__main__":
    key = jax.random.PRNGKey(0)

    # --- small f32 example matching the module's typical use -----------------
    batch, seq, dim = 2, 8, 32
    x = jax.random.normal(key, (batch, seq, dim), dtype=jnp.float32)
    g = jnp.ones((dim,), dtype=jnp.float32)   # nn.Parameter(torch.ones(dim))

    out = jax.block_until_ready(rmsnorm(x, g, eps=1e-8))
    ref = _ref_rmsnorm(x, g, eps=1e-8)
    assert out.shape == x.shape
    assert jnp.allclose(out, ref, atol=1e-5, rtol=1e-5)

    # --- lane-dense f32 path (dim multiple of 128), multi-step grid ----------
    k1 = jax.random.PRNGKey(0)
    xw = jax.random.normal(k1, (2, 64, 256), dtype=jnp.float32)
    gw = jax.random.normal(jax.random.PRNGKey(1), (256,), dtype=jnp.float32)
    outw = jax.block_until_ready(rmsnorm(xw, gw, eps=1e-8))
    refw = _ref_rmsnorm(xw, gw, eps=1e-8)
    assert outw.shape == xw.shape
    assert jnp.allclose(outw, refw, atol=1e-5, rtol=1e-5)

    # --- bf16 path + non-divisible row count (exercises masked tail block) ---
    k2 = jax.random.PRNGKey(0)
    xb = jax.random.normal(k2, (3, 5, 256), dtype=jnp.bfloat16)
    gb = jnp.ones((256,), dtype=jnp.bfloat16)
    outb = jax.block_until_ready(rmsnorm(xb, gb, eps=1e-8))
    refb = _ref_rmsnorm(xb, gb, eps=1e-8)
    assert outb.shape == xb.shape
    assert jnp.allclose(outb.astype(jnp.float32), refb, atol=2e-2, rtol=2e-2)

    print("KERNEL_OK")
</pallas_src>

<mosaic_0001>
module attributes {stable_mosaic.version = 11 : i64} {
  func.func @_rmsnorm_kernel(%arg0: i32, %arg1: memref<16x32xf32, #tpu.memory_space<vmem>>, %arg2: memref<1x32xf32, #tpu.memory_space<vmem>>, %arg3: memref<16x32xf32, #tpu.memory_space<vmem>>) attributes {dimension_semantics = [#tpu.dimension_semantics<parallel>], iteration_bounds = array<i64: 1>, scalar_prefetch = 0 : i64, scratch_operands = 0 : i64, tpu.core_type = #tpu.core_type<tc>, window_params = [{transform_indices = @transform_0, window_bounds = array<i64: 16, 32>}, {pipeline_mode = #tpu.pipeline_mode<synchronous>, transform_indices = @transform_1, window_bounds = array<i64: 1, 32>}, {transform_indices = @transform_2, window_bounds = array<i64: 16, 32>}]} {
    %c0 = arith.constant 0 : index
    %c0_0 = arith.constant 0 : index
    %0 = vector.load %arg1[%c0, %c0_0] : memref<16x32xf32, #tpu.memory_space<vmem>>, vector<16x32xf32>
    %1 = arith.mulf %0, %0 : vector<16x32xf32>
    %cst = arith.constant dense<0.000000e+00> : vector<16xf32>
    %2 = vector.multi_reduction <add>, %1, %cst [1] : vector<16x32xf32> to vector<16xf32>
    %3 = vector.shape_cast %2 : vector<16xf32> to vector<16x1xf32>
    %cst_1 = arith.constant 3.125000e-02 : f32
    %4 = vector.broadcast %cst_1 : f32 to vector<16x1xf32>
    %5 = arith.mulf %3, %4 : vector<16x1xf32>
    %cst_2 = arith.constant 1.000000e-16 : f32
    %6 = vector.broadcast %cst_2 : f32 to vector<16x1xf32>
    %7 = arith.maximumf %5, %6 : vector<16x1xf32>
    %8 = math.rsqrt %7 : vector<16x1xf32>
    %9 = vector.broadcast %8 : vector<16x1xf32> to vector<16x32xf32>
    %10 = arith.mulf %0, %9 : vector<16x32xf32>
    %c0_3 = arith.constant 0 : index
    %c0_4 = arith.constant 0 : index
    %11 = vector.load %arg2[%c0_3, %c0_4] : memref<1x32xf32, #tpu.memory_space<vmem>>, vector<1x32xf32>
    %12 = vector.broadcast %11 : vector<1x32xf32> to vector<16x32xf32>
    %13 = arith.mulf %10, %12 : vector<16x32xf32>
    %c0_5 = arith.constant 0 : index
    %c0_6 = arith.constant 0 : index
    %14 = vector.load %arg3[%c0_5, %c0_6] : memref<16x32xf32, #tpu.memory_space<vmem>>, vector<16x32xf32>
    tpu.vector_store %arg3[%c0_5, %c0_6], %13 {strides = array<i32>} : memref<16x32xf32, #tpu.memory_space<vmem>>, vector<16x32xf32>,
    return
  }
  func.func @transform_0(%arg0: i32) -> (i32, i32) {
    %c0_i32 = arith.constant 0 : i32
    %c0_i32_0 = arith.constant 0 : i32
    return %arg0, %c0_i32 : i32, i32
  }
  func.func @transform_1(%arg0: i32) -> (i32, i32) {
    %c0_i32 = arith.constant 0 : i32
    %c0_i32_0 = arith.constant 0 : i32
    %c0_i32_1 = arith.constant 0 : i32
    return %c0_i32, %c0_i32_0 : i32, i32
  }
  func.func @transform_2(%arg0: i32) -> (i32, i32) {
    %c0_i32 = arith.constant 0 : i32
    %c0_i32_0 = arith.constant 0 : i32
    return %arg0, %c0_i32 : i32, i32
  }
}

</mosaic_0001>

<bundles_post_ra>
// kernel: tpu_custom_call.1
= control target key start
LH: loop header
LB: loop body
LE: loop exit
PB: predicated region body
PF: predicated region fallthrough
CT: control target
= control target key end

     0   :  { %7 = vsyncpa [#allocation3], 0  ;;  %s164_s0 = inlined_call_operand.hbm [shape: f32[16,32], index: 0, kind: input, shape index: {}]   ;;  %s165_s1 = inlined_call_operand.vmem [shape: f32[1,32], index: 1, kind: input, shape index: {}]   ;;  %s166_s2 = inlined_call_operand.hbm [shape: f32[16,32], index: 2, kind: output, shape index: {}]  }
   0x1   :  { %8 = vsyncpa [#allocation4], 0  ;;  %s126_s9 = smov [#allocation2]  }
   0x2   :  { %s14_s10 = sshll.u32 %s126_s9, 4  ;;  %s15_s10 = int_to_ptr.vmem [resolvable:$true] %s14_s10 }
   0x3   :  { %s90_s11 = scalar_lea.vmem %s15_s10, 256  ;;  %p95_p1 = scmp.lt.s32.totalorder %s15_s10, %s15_s10 }
   0x4   :  { %p91_p0 = scmp.ne.s32.totalorder %s15_s10, %s90_s11  ;;  %p96_p2 = scmp.lt.s32.totalorder %s90_s11, %s90_s11 }
   0x6   :  { %p97_p3 = por %p96_p2, %p95_p1 }
   0x8   :  { %p98_p4 = pnand %p97_p3, %p91_p0 }
   0xa   :  { %101 = shalt.err (!%p98_p4)
}
   0xb   :  { %s127_s12 = smov 128   ;;  %s128_s13 = smov 8  }
   0xc   :  { %20 = dma.hbm_to_vmem [thread:$0]  %s164_s0, 256, %s15_s10, [#allocation3], %s127_s12, %s127_s12, %s128_s13  }
   0xd   :  { %122 = dma.done.wait [#allocation3], 256  }
   0xe   :  { %123 = vsyncadd [#allocation3], 4294967040  ;;  %v26_v0 = vld [vmem:[#allocation2] sm:$0xff]  ;;  %vm30_vm0 = vcmask 261120   ;;  %v27_v1 = vld [vmem:[#allocation2 + $0x8] sm:$0xff]  ;;  %s129_s17 = smov [#allocation5]  }
   0xf   :  { %v28_v2 = vmul.f32 %v26_v0, %v26_v0  ;;  %v29_v3 = vmul.f32 %v27_v1, %v27_v1  ;;  %v73_v13 = vld [vmem:[%s165_s1] ss:$0 sm:$0xff]  ;;  %s61_s18 = sshll.u32 %s129_s17, 4  ;;  %s62_s18 = int_to_ptr.vmem [resolvable:$true] %s61_s18 }
  0x10   :  { %s102_s19 = scalar_lea.vmem %s62_s18, 256  ;;  %p107_p6 = scmp.lt.s32.totalorder %s62_s18, %s62_s18 }
  0x11   :  { %v31_v4 = vsel %vm30_vm0, %v28_v2, 0.0  ;;  %v34_v5 = vsel %vm30_vm0, %v29_v3, 0.0  ;;  %p103_p5 = scmp.ne.s32.totalorder %s62_s18, %s102_s19  ;;  %p108_p7 = scmp.lt.s32.totalorder %s102_s19, %s102_s19 }
  0x12   :  { %32 = vadd.xlane.f32.xlu0 %v31_v4 }
  0x13   :  { %p109_p8 = por %p108_p7, %p107_p6 }
  0x15   :  { %p110_p9 = pnand %p109_p8, %p103_p5 }
  0x16   :  { %35 = vadd.xlane.f32.xlu0 %v34_v5 }
  0x9b   :  { %v33_v6 = vpop.xlane.xlu0 %32 }
  0x9c   :  { %v37_v7 = vmul.f32 0.03125, %v33_v6 }
  0x9e   :  { %v39_v8 = vmax.f32 %v37_v7, 1e-16 }
  0x9f   :  { %v36_v9 = vpop.xlane.xlu0 %35 }
  0xa0   :  { %78 = vrsqrt.f32 %v39_v8  ;;  %v38_v10 = vmul.f32 0.03125, %v36_v9 }
  0xa2   :  { %v40_v11 = vmax.f32 %v38_v10, 1e-16 }
  0xa4   :  { %80 = vrsqrt.f32 %v40_v11 }
  0xad   :  { %v79_v12 = vpop.eup %78 }
  0xae   :  { %v43_v14 = vmul.f32 %v79_v12, %v26_v0 }
  0xb0   :  { %v52_v15 = vmul.f32 %v73_v13, %v43_v14 }
  0xb1   :  { %v81_v16 = vpop.eup %80 }
  0xb2   :  { %v44_v17 = vmul.f32 %v81_v16, %v27_v1  ;;  %54 = vst.msk [vmem:[#allocation5] sm:$0xff] %vm30_vm0, %v52_v15 }
  0xb4   :  { %v53_v18 = vmul.f32 %v73_v13, %v44_v17 }
  0xb6   :  { %55 = vst.msk [vmem:[#allocation5 + $0x8] sm:$0xff] %vm30_vm0, %v53_v18 }
  0xb7   :  { %113 = shalt.err (!%p110_p9)
}
  0xb8   :  { %67 = dma.vmem_to_hbm [thread:$0]  %s62_s18, 256, %s166_s2, [#allocation4], %s127_s12, %s127_s12, %s128_s13  }
  0xb9   :  { %124 = dma.done.wait [#allocation4], 256  }
  0xba   :  { %125 = vsyncadd [#allocation4], 4294967040 }
  0xbb   :  { %71 = vsyncpa [#allocation3], 1 }
  0xbc   :  { %72 = vsyncpa [#allocation4], 1 }

</bundles_post_ra>
